<compile_context>
chip_gen: v5e
topology: v5e:2x2
jax: 0.10.0
libtpu: 0.0.40
codegen_flags: <defaults>
</compile_context>

<pallas_src>
import jax
import jax.numpy as jnp
from jax.experimental import pallas as pl
from jax.experimental.pallas import tpu as pltpu

IN_DIM, H1, H2, OUT_DIM = 28 * 28, 300, 100, 10
# Lane-aligned (multiple-of-128) padded dims.
H1_P, H2_P, OUT_P = 384, 128, 128


def _round_up(n, m):
    return (n + m - 1) // m * m


def mlp_kernel(x_ref, w1_ref, b1_ref, w2_ref, b2_ref, w3_ref, b3_ref, o_ref):
    # One (TM, IN_DIM) tile of the batch per grid step; all (padded, bf16)
    # weights are VMEM-resident across the whole grid.
    x = x_ref[...]                                                  # bf16 (TM, 784)
    h1 = jnp.dot(x, w1_ref[...], preferred_element_type=jnp.float32) + b1_ref[...]
    h1 = jnp.maximum(h1, 0.0)                                       # F.relu(fc1(x)), f32
    h2 = jnp.dot(h1.astype(jnp.bfloat16), w2_ref[...],
                 preferred_element_type=jnp.float32) + b2_ref[...]
    h2 = jnp.maximum(h2, 0.0)                                       # F.relu(fc2(x)), f32
    o = jnp.dot(h2.astype(jnp.bfloat16), w3_ref[...],
                preferred_element_type=jnp.float32) + b3_ref[...]
    o_ref[...] = o.astype(o_ref.dtype)                              # fc3(x), no activation


def pad_params(params):
    """One-time wrapper-side padding: zero-pad to lane-aligned dims, cast W to bf16."""
    w1, b1, w2, b2, w3, b3 = params
    w1p = jnp.zeros((IN_DIM, H1_P), jnp.bfloat16).at[:, :H1].set(w1.astype(jnp.bfloat16))
    b1p = jnp.zeros((1, H1_P), jnp.float32).at[:, :H1].set(b1)
    w2p = jnp.zeros((H1_P, H2_P), jnp.bfloat16).at[:H1, :H2].set(w2.astype(jnp.bfloat16))
    b2p = jnp.zeros((1, H2_P), jnp.float32).at[:, :H2].set(b2)
    w3p = jnp.zeros((H2_P, OUT_P), jnp.bfloat16).at[:H2, :OUT_DIM].set(w3.astype(jnp.bfloat16))
    b3p = jnp.zeros((1, OUT_P), jnp.float32).at[:, :OUT_DIM].set(b3)
    return (w1p, b1p, w2p, b2p, w3p, b3p)


def net_forward(x, padded_params, *, tm=512):
    """x: (B, 784) float.  padded_params: output of pad_params.  Returns (B, 10) f32."""
    w1, b1, w2, b2, w3, b3 = padded_params
    B = x.shape[0]
    # Batch tile: multiple of 8 sublanes, capped by the (rounded-up) batch.
    tm = max(8, min(tm, _round_up(B, 8)))
    b_pad = _round_up(B, tm)

    x = x.astype(jnp.bfloat16)
    if b_pad != B:
        x = jnp.pad(x, ((0, b_pad - B), (0, 0)))

    grid = (b_pad // tm,)

    def const(shape):
        return pl.BlockSpec(shape, lambda i: (0, 0))  # weights resident across grid

    in_specs = [
        pl.BlockSpec((tm, IN_DIM), lambda i: (i, 0)),   # x tile, pipelined
        const((IN_DIM, H1_P)), const((1, H1_P)),
        const((H1_P, H2_P)),   const((1, H2_P)),
        const((H2_P, OUT_P)),  const((1, OUT_P)),
    ]
    out_specs = pl.BlockSpec((tm, OUT_P), lambda i: (i, 0))

    flops = 2 * b_pad * (IN_DIM * H1_P + H1_P * H2_P + H2_P * OUT_P)
    bytes_accessed = (
        b_pad * IN_DIM * 2                                   # x (bf16)
        + (w1.size + w2.size + w3.size) * 2                  # weights (bf16)
        + (b1.size + b2.size + b3.size) * 4                  # biases (f32)
        + b_pad * OUT_P * 4                                  # output (f32)
    )

    out = pl.pallas_call(
        mlp_kernel,
        out_shape=jax.ShapeDtypeStruct((b_pad, OUT_P), jnp.float32),
        grid=grid,
        in_specs=in_specs,
        out_specs=out_specs,
        compiler_params=pltpu.CompilerParams(
            dimension_semantics=("parallel",),       # shard batch tiles across TCs (v7x)
            vmem_limit_bytes=64 * 1024 * 1024,
        ),
        cost_estimate=pl.CostEstimate(
            flops=flops, transcendentals=0, bytes_accessed=bytes_accessed),
    )(x, w1, b1, w2, b2, w3, b3)

    return out[:B, :OUT_DIM]


def init_params(key):
    """Deterministic init mimicking PyTorch nn.Linear default (U[-1/sqrt(fan_in), +1/sqrt(fan_in)])."""
    def linear(key, fan_in, fan_out):
        kw, kb = jax.random.split(key)
        bound = 1.0 / jnp.sqrt(fan_in)
        w = jax.random.uniform(kw, (fan_in, fan_out), jnp.float32, -bound, bound)
        b = jax.random.uniform(kb, (1, fan_out), jnp.float32, -bound, bound)
        return w, b

    k1, k2, k3 = jax.random.split(key, 3)
    w1, b1 = linear(k1, IN_DIM, H1)
    w2, b2 = linear(k2, H1, H2)
    w3, b3 = linear(k3, H2, OUT_DIM)
    return (w1, b1, w2, b2, w3, b3)


if __name__ == "__main__":
    key = jax.random.PRNGKey(0)
    k_params, k_x = jax.random.split(key)

    params = init_params(k_params)
    padded = pad_params(params)

    B = 8  # small batch for the check (any B works; batch is padded to the tile)
    x = jax.random.normal(k_x, (B, IN_DIM), jnp.float32)

    out = net_forward(x, padded)
    out = jax.block_until_ready(out)
    assert out.shape == (B, OUT_DIM)

    # Reference in plain JAX with the same bf16 weights / f32 accumulation
    # (same math as the PyTorch forward, modulo the bf16 cast).
    w1p, b1p, w2p, b2p, w3p, b3p = padded
    xb = x.astype(jnp.bfloat16)
    ref = jnp.maximum(jnp.dot(xb, w1p, preferred_element_type=jnp.float32) + b1p, 0.0)
    ref = jnp.maximum(jnp.dot(ref.astype(jnp.bfloat16), w2p,
                              preferred_element_type=jnp.float32) + b2p, 0.0)
    ref = jnp.dot(ref.astype(jnp.bfloat16), w3p,
                  preferred_element_type=jnp.float32) + b3p
    ref = ref[:, :OUT_DIM]

    assert jnp.allclose(out, ref, atol=2e-2, rtol=2e-2), float(jnp.max(jnp.abs(out - ref)))

    print("KERNEL_OK")
</pallas_src>

<mosaic_0001>
module attributes {stable_mosaic.version = 11 : i64} {
  func.func @mlp_kernel(%arg0: i32, %arg1: memref<8x784xbf16, #tpu.memory_space<vmem>>, %arg2: memref<784x384xbf16, #tpu.memory_space<vmem>>, %arg3: memref<1x384xf32, #tpu.memory_space<vmem>>, %arg4: memref<384x128xbf16, #tpu.memory_space<vmem>>, %arg5: memref<1x128xf32, #tpu.memory_space<vmem>>, %arg6: memref<128x128xbf16, #tpu.memory_space<vmem>>, %arg7: memref<1x128xf32, #tpu.memory_space<vmem>>, %arg8: memref<8x128xf32, #tpu.memory_space<vmem>>) attributes {dimension_semantics = [#tpu.dimension_semantics<parallel>], iteration_bounds = array<i64: 1>, scalar_prefetch = 0 : i64, scratch_operands = 0 : i64, tpu.core_type = #tpu.core_type<tc>, window_params = [{transform_indices = @transform_0, window_bounds = array<i64: 8, 784>}, {pipeline_mode = #tpu.pipeline_mode<synchronous>, transform_indices = @transform_1, window_bounds = array<i64: 784, 384>}, {pipeline_mode = #tpu.pipeline_mode<synchronous>, transform_indices = @transform_2, window_bounds = array<i64: 1, 384>}, {pipeline_mode = #tpu.pipeline_mode<synchronous>, transform_indices = @transform_3, window_bounds = array<i64: 384, 128>}, {pipeline_mode = #tpu.pipeline_mode<synchronous>, transform_indices = @transform_4, window_bounds = array<i64: 1, 128>}, {pipeline_mode = #tpu.pipeline_mode<synchronous>, transform_indices = @transform_5, window_bounds = array<i64: 128, 128>}, {pipeline_mode = #tpu.pipeline_mode<synchronous>, transform_indices = @transform_6, window_bounds = array<i64: 1, 128>}, {transform_indices = @transform_7, window_bounds = array<i64: 8, 128>}]} {
    %c0 = arith.constant 0 : index
    %c0_0 = arith.constant 0 : index
    %0 = vector.load %arg1[%c0, %c0_0] : memref<8x784xbf16, #tpu.memory_space<vmem>>, vector<8x784xbf16>
    %c0_1 = arith.constant 0 : index
    %c0_2 = arith.constant 0 : index
    %1 = vector.load %arg2[%c0_1, %c0_2] : memref<784x384xbf16, #tpu.memory_space<vmem>>, vector<784x384xbf16>
    %cst = arith.constant dense<0.000000e+00> : vector<8x384xf32>
    %2 = tpu.matmul %0, %1, %cst {dimension_numbers = #tpu.dot_dimension_numbers<[1], [0], [0], [1], [0, 0, 1, 1], [], []>} : vector<8x784xbf16>, vector<784x384xbf16>, vector<8x384xf32> -> vector<8x384xf32>
    %c0_3 = arith.constant 0 : index
    %c0_4 = arith.constant 0 : index
    %3 = vector.load %arg3[%c0_3, %c0_4] : memref<1x384xf32, #tpu.memory_space<vmem>>, vector<1x384xf32>
    %4 = vector.broadcast %3 : vector<1x384xf32> to vector<8x384xf32>
    %5 = arith.addf %2, %4 : vector<8x384xf32>
    %cst_5 = arith.constant 0.000000e+00 : f32
    %6 = vector.broadcast %cst_5 : f32 to vector<8x384xf32>
    %7 = arith.maximumf %5, %6 : vector<8x384xf32>
    %8 = arith.truncf %7 : vector<8x384xf32> to vector<8x384xbf16>
    %c0_6 = arith.constant 0 : index
    %c0_7 = arith.constant 0 : index
    %9 = vector.load %arg4[%c0_6, %c0_7] : memref<384x128xbf16, #tpu.memory_space<vmem>>, vector<384x128xbf16>
    %cst_8 = arith.constant dense<0.000000e+00> : vector<8x128xf32>
    %10 = tpu.matmul %8, %9, %cst_8 {dimension_numbers = #tpu.dot_dimension_numbers<[1], [0], [0], [1], [0, 0, 1, 1], [], []>} : vector<8x384xbf16>, vector<384x128xbf16>, vector<8x128xf32> -> vector<8x128xf32>
    %c0_9 = arith.constant 0 : index
    %c0_10 = arith.constant 0 : index
    %11 = vector.load %arg5[%c0_9, %c0_10] : memref<1x128xf32, #tpu.memory_space<vmem>>, vector<1x128xf32>
    %12 = vector.broadcast %11 : vector<1x128xf32> to vector<8x128xf32>
    %13 = arith.addf %10, %12 : vector<8x128xf32>
    %cst_11 = arith.constant 0.000000e+00 : f32
    %14 = vector.broadcast %cst_11 : f32 to vector<8x128xf32>
    %15 = arith.maximumf %13, %14 : vector<8x128xf32>
    %16 = arith.truncf %15 : vector<8x128xf32> to vector<8x128xbf16>
    %c0_12 = arith.constant 0 : index
    %c0_13 = arith.constant 0 : index
    %17 = vector.load %arg6[%c0_12, %c0_13] : memref<128x128xbf16, #tpu.memory_space<vmem>>, vector<128x128xbf16>
    %cst_14 = arith.constant dense<0.000000e+00> : vector<8x128xf32>
    %18 = tpu.matmul %16, %17, %cst_14 {dimension_numbers = #tpu.dot_dimension_numbers<[1], [0], [0], [1], [0, 0, 1, 1], [], []>} : vector<8x128xbf16>, vector<128x128xbf16>, vector<8x128xf32> -> vector<8x128xf32>
    %c0_15 = arith.constant 0 : index
    %c0_16 = arith.constant 0 : index
    %19 = vector.load %arg7[%c0_15, %c0_16] : memref<1x128xf32, #tpu.memory_space<vmem>>, vector<1x128xf32>
    %20 = vector.broadcast %19 : vector<1x128xf32> to vector<8x128xf32>
    %21 = arith.addf %18, %20 : vector<8x128xf32>
    %c0_17 = arith.constant 0 : index
    %c0_18 = arith.constant 0 : index
    %22 = vector.load %arg8[%c0_17, %c0_18] : memref<8x128xf32, #tpu.memory_space<vmem>>, vector<8x128xf32>
    tpu.vector_store %arg8[%c0_17, %c0_18], %21 {strides = array<i32>} : memref<8x128xf32, #tpu.memory_space<vmem>>, vector<8x128xf32>,
    return
  }
  func.func @transform_0(%arg0: i32) -> (i32, i32) {
    %c0_i32 = arith.constant 0 : i32
    %c0_i32_0 = arith.constant 0 : i32
    return %arg0, %c0_i32 : i32, i32
  }
  func.func @transform_1(%arg0: i32) -> (i32, i32) {
    %c0_i32 = arith.constant 0 : i32
    %c0_i32_0 = arith.constant 0 : i32
    %c0_i32_1 = arith.constant 0 : i32
    return %c0_i32, %c0_i32_0 : i32, i32
  }
  func.func @transform_2(%arg0: i32) -> (i32, i32) {
    %c0_i32 = arith.constant 0 : i32
    %c0_i32_0 = arith.constant 0 : i32
    %c0_i32_1 = arith.constant 0 : i32
    return %c0_i32, %c0_i32_0 : i32, i32
  }
  func.func @transform_3(%arg0: i32) -> (i32, i32) {
    %c0_i32 = arith.constant 0 : i32
    %c0_i32_0 = arith.constant 0 : i32
    %c0_i32_1 = arith.constant 0 : i32
    return %c0_i32, %c0_i32_0 : i32, i32
  }
  func.func @transform_4(%arg0: i32) -> (i32, i32) {
    %c0_i32 = arith.constant 0 : i32
    %c0_i32_0 = arith.constant 0 : i32
    %c0_i32_1 = arith.constant 0 : i32
    return %c0_i32, %c0_i32_0 : i32, i32
  }
  func.func @transform_5(%arg0: i32) -> (i32, i32) {
    %c0_i32 = arith.constant 0 : i32
    %c0_i32_0 = arith.constant 0 : i32
    %c0_i32_1 = arith.constant 0 : i32
    return %c0_i32, %c0_i32_0 : i32, i32
  }
  func.func @transform_6(%arg0: i32) -> (i32, i32) {
    %c0_i32 = arith.constant 0 : i32
    %c0_i32_0 = arith.constant 0 : i32
    %c0_i32_1 = arith.constant 0 : i32
    return %c0_i32, %c0_i32_0 : i32, i32
  }
  func.func @transform_7(%arg0: i32) -> (i32, i32) {
    %c0_i32 = arith.constant 0 : i32
    %c0_i32_0 = arith.constant 0 : i32
    return %arg0, %c0_i32 : i32, i32
  }
}

</mosaic_0001>

<bundles_post_ra>
// kernel: tpu_custom_call.1
= control target key start
LH: loop header
LB: loop body
LE: loop exit
PB: predicated region body
PF: predicated region fallthrough
CT: control target
= control target key end

     0   :  { %12 = vsyncpa [#allocation3], 0  ;;  %s2918_s0 = inlined_call_operand.hbm [shape: bf16[8,784], index: 0, kind: input, shape index: {}]   ;;  %s2919_s1 = inlined_call_operand.hbm [shape: bf16[784,384], index: 1, kind: input, shape index: {}]   ;;  %s2920_s2 = inlined_call_operand.hbm [shape: f32[1,384], index: 2, kind: input, shape index: {}]   ;;  %s2921_s3 = inlined_call_operand.hbm [shape: bf16[384,128], index: 3, kind: input, shape index: {}]   ;;  %s2922_s4 = inlined_call_operand.vmem [shape: f32[1,128], index: 4, kind: input, shape index: {}]   ;;  %s2923_s5 = inlined_call_operand.hbm [shape: bf16[128,128], index: 5, kind: input, shape index: {}]   ;;  %s2924_s6 = inlined_call_operand.vmem [shape: f32[1,128], index: 6, kind: input, shape index: {}]   ;;  %s2925_s7 = inlined_call_operand.hbm [shape: f32[8,128], index: 7, kind: output, shape index: {}]  }
   0x1   :  { %13 = vsyncpa [#allocation6], 0 }
   0x2   :  { %14 = vsyncpa [#allocation9], 0  ;;  %s31_s26 = sshll.u32 %s2919_s1, 4  ;;  %s32_s26 = int_to_ptr.hbm [resolvable:$true] %s31_s26 }
   0x3   :  { %15 = vsyncpa [#allocation4], 0  ;;  %s2801_s27 = smov [#allocation5]   ;;  %s55_s8 = sshll.u32 %s2921_s3, 4  ;;  %s56_s8 = int_to_ptr.hbm [resolvable:$true] %s55_s8 }
   0x4   :  { %s33_s28 = sshll.u32 %s2801_s27, 4  ;;  %s2802_s9 = smov 192   ;;  %s34_s28 = int_to_ptr.vmem [resolvable:$true] %s33_s28 }
   0x5   :  { %s2803_s10 = smov 12   ;;  %s2804_s11 = smov [#allocation8]  }
   0x6   :  { %39 = dma.hbm_to_vmem [thread:$0]  %s32_s26, 18816, %s34_s28, [#allocation6], %s2802_s9, %s2802_s9, %s2803_s10  }
   0x7   :  { %s57_s12 = sshll.u32 %s2804_s11, 4  ;;  %s2805_s13 = smov 64   ;;  %s58_s12 = int_to_ptr.vmem [resolvable:$true] %s57_s12 }
   0x8   :  { %s2806_s14 = smov 4   ;;  %s21_s16 = sshll.u32 %s2918_s0, 4  ;;  %s22_s16 = int_to_ptr.hbm [resolvable:$true] %s21_s16 }
   0x9   :  { %63 = dma.hbm_to_vmem [thread:$0]  %s56_s8, 3072, %s58_s12, [#allocation9], %s2805_s13, %s2805_s13, %s2806_s14  }
   0xa   :  { %s2807_s17 = smov [#allocation2]   ;;  %s45_s20 = sshll.u32 %s2920_s2, 4  ;;  %s46_s20 = int_to_ptr.hbm [resolvable:$true] %s45_s20 }
   0xb   :  { %s23_s18 = sshll.u32 %s2807_s17, 4  ;;  %s2808_s21 = smov [#allocation7]   ;;  %s24_s18 = int_to_ptr.vmem [resolvable:$true] %s23_s18 }
   0xc   :  { %26 = dma.hbm_to_vmem [thread:$0]  %s22_s16, 448, %s24_s18, [#allocation3]  }
   0xd   :  { %s47_s22 = sshll.u32 %s2808_s21, 4  ;;  %s70_s25 = sshll.u32 %s2923_s5, 4  ;;  %s48_s22 = int_to_ptr.vmem [resolvable:$true] %s47_s22  ;;  %s71_s25 = int_to_ptr.hbm [resolvable:$true] %s70_s25 }
   0xe   :  { %50 = dma.hbm_to_vmem [thread:$0]  %s46_s20, 48, %s48_s22, [#allocation6]  }
   0xf   :  { %s2809_s0 = smov [#allocation10]  }
  0x10   :  { %s72_s26 = sshll.u32 %s2809_s0, 4  ;;  %s73_s26 = int_to_ptr.vmem [resolvable:$true] %s72_s26 }
  0x11   :  { %78 = dma.hbm_to_vmem [thread:$0]  %s71_s25, 1024, %s73_s26, [#allocation9], %s2805_s13, %s2805_s13, %s2806_s14  }
  0x12   :  { %2793 = dma.done.wait [#allocation3], 448  }
  0x13   :  { %2794 = vsyncadd [#allocation3], 4294966848 }
  0x14   :  { %2795 = dma.done.wait [#allocation6], 18864  }
  0x15   :  { %2796 = vsyncadd [#allocation6], 4294948432 }
  0x16   :  { %2797 = dma.done.wait [#allocation9], 4096  }
  0x17   :  { %2798 = vsyncadd [#allocation9], 4294963200  ;;  %v1825_v0 = vld [vmem:[#allocation5 + $0xa8] sm:$0xf]  ;;  %v2480_v1 = vld [vmem:[#allocation5 + $0xb0] sm:$0xf0] }
  0x18   :  { %v1921_v2 = vld [vmem:[#allocation5 + $0x168] sm:$0xf]  ;;  %v1826_v3 = vor.u32 %v2480_v1, %v1825_v0  ;;  %v2504_v4 = vld [vmem:[#allocation5 + $0x170] sm:$0xf0]  ;;  %v1813_v9 = vld [vmem:[#allocation5 + $0x90] sm:$0xf] }
  0x19   :  { %v2113_v5 = vld [vmem:[#allocation5 + $0x2e8] sm:$0xf]  ;;  %v2552_v6 = vld [vmem:[#allocation5 + $0x2f0] sm:$0xf0]  ;;  %v1922_v7 = vor.u32 %v2504_v4, %v1921_v2  ;;  %v2477_v10 = vld [vmem:[#allocation5 + $0x98] sm:$0xf0] }
  0x1a   :  { %v2114_v8 = vor.u32 %v2552_v6, %v2113_v5  ;;  %v1909_v11 = vld [vmem:[#allocation5 + $0x150] sm:$0xf]  ;;  %1122 = vmatpush.bf16.msra.mxu0 %v1826_v3  ;;  %v1814_v12 = vor.u32 %v2477_v10, %v1813_v9  ;;  %v2501_v13 = vld [vmem:[#allocation5 + $0x158] sm:$0xf0]  ;;  %v2017_v18 = vld [vmem:[#allocation5 + $0x228] sm:$0xf] }
  0x1b   :  { %v2101_v14 = vld [vmem:[#allocation5 + $0x2d0] sm:$0xf]  ;;  %v2549_v15 = vld [vmem:[#allocation5 + $0x2d8] sm:$0xf0]  ;;  %1135 = vmatpush.bf16.msra.mxu1 %v1922_v7  ;;  %v1910_v16 = vor.u32 %v2501_v13, %v1909_v11  ;;  %v2528_v19 = vld [vmem:[#allocation5 + $0x230] sm:$0xf0] }
  0x1c   :  { %1161 = vmatpush.bf16.msra.mxu3 %v2114_v8  ;;  %v2102_v17 = vor.u32 %v2549_v15, %v2101_v14  ;;  %v1801_v20 = vld [vmem:[#allocation5 + $0x78] sm:$0xf]  ;;  %v2018_v21 = vor.u32 %v2528_v19, %v2017_v18  ;;  %v2474_v22 = vld [vmem:[#allocation5 + $0x80] sm:$0xf0]  ;;  %v2005_v27 = vld [vmem:[#allocation5 + $0x210] sm:$0xf] }
  0x1d   :  { %v1897_v23 = vld [vmem:[#allocation5 + $0x138] sm:$0xf]  ;;  %v2498_v24 = vld [vmem:[#allocation5 + $0x140] sm:$0xf0]  ;;  %v1802_v28 = vor.u32 %v2474_v22, %v1801_v20  ;;  %v2525_v29 = vld [vmem:[#allocation5 + $0x218] sm:$0xf0] }
  0x1e   :  { %v2089_v25 = vld [vmem:[#allocation5 + $0x2b8] sm:$0xf]  ;;  %v2546_v26 = vld [vmem:[#allocation5 + $0x2c0] sm:$0xf0]  ;;  %1123 = vmatpush.bf16.msra.mxu0 %v1814_v12  ;;  %1148 = vmatpush.bf16.msra.mxu2 %v2018_v21  ;;  %v1789_v30 = vld [vmem:[#allocation5 + $0x60] sm:$0xf]  ;;  %v1898_v32 = vor.u32 %v2498_v24, %v1897_v23  ;;  %v2006_v34 = vor.u32 %v2525_v29, %v2005_v27 }
  0x1f   :  { %v2471_v31 = vld [vmem:[#allocation5 + $0x68] sm:$0xf0]  ;;  %1136 = vmatpush.bf16.msra.mxu1 %v1910_v16  ;;  %v2090_v33 = vor.u32 %v2546_v26, %v2089_v25  ;;  %v1885_v35 = vld [vmem:[#allocation5 + $0x120] sm:$0xf]  ;;  %v1993_v39 = vld [vmem:[#allocation5 + $0x1f8] sm:$0xf] }
  0x20   :  { %1162 = vmatpush.bf16.msra.mxu3 %v2102_v17  ;;  %v2495_v36 = vld [vmem:[#allocation5 + $0x128] sm:$0xf0]  ;;  %v2077_v37 = vld [vmem:[#allocation5 + $0x2a0] sm:$0xf]  ;;  %v2522_v40 = vld [vmem:[#allocation5 + $0x200] sm:$0xf0]  ;;  %v1790_v41 = vor.u32 %v2471_v31, %v1789_v30 }
  0x21   :  { %v2543_v38 = vld [vmem:[#allocation5 + $0x2a8] sm:$0xf0]  ;;  %v1994_v42 = vor.u32 %v2522_v40, %v1993_v39  ;;  %v1777_v43 = vld [vmem:[#allocation5 + $0x48] sm:$0xf]  ;;  %v2468_v44 = vld [vmem:[#allocation5 + $0x50] sm:$0xf0]  ;;  %v1886_v45 = vor.u32 %v2495_v36, %v1885_v35 }
  0x22   :  { %1124 = vmatpush.bf16.msra.mxu0 %v1802_v28  ;;  %1149 = vmatpush.bf16.msra.mxu2 %v2006_v34  ;;  %v2078_v46 = vor.u32 %v2543_v38, %v2077_v37  ;;  %v1873_v47 = vld [vmem:[#allocation5 + $0x108] sm:$0xf]  ;;  %v1981_v48 = vld [vmem:[#allocation5 + $0x1e0] sm:$0xf]  ;;  %v2519_v49 = vld [vmem:[#allocation5 + $0x1e8] sm:$0xf0]  ;;  %v1778_v53 = vor.u32 %v2468_v44, %v1777_v43 }
  0x23   :  { %1137 = vmatpush.bf16.msra.mxu1 %v1898_v32  ;;  %v2492_v50 = vld [vmem:[#allocation5 + $0x110] sm:$0xf0]  ;;  %v2065_v51 = vld [vmem:[#allocation5 + $0x288] sm:$0xf]  ;;  %v1982_v54 = vor.u32 %v2519_v49, %v1981_v48  ;;  %v1765_v55 = vld [vmem:[#allocation5 + $0x30] sm:$0xf] }
  0x24   :  { %1163 = vmatpush.bf16.msra.mxu3 %v2090_v33  ;;  %v2540_v52 = vld [vmem:[#allocation5 + $0x290] sm:$0xf0]  ;;  %v2465_v56 = vld [vmem:[#allocation5 + $0x38] sm:$0xf0]  ;;  %v1874_v57 = vor.u32 %v2492_v50, %v1873_v47  ;;  %v1861_v59 = vld [vmem:[#allocation5 + $0xf0] sm:$0xf] }
  0x25   :  { %v2066_v58 = vor.u32 %v2540_v52, %v2065_v51  ;;  %v1969_v60 = vld [vmem:[#allocation5 + $0x1c8] sm:$0xf]  ;;  %v2516_v61 = vld [vmem:[#allocation5 + $0x1d0] sm:$0xf0]  ;;  %v2489_v62 = vld [vmem:[#allocation5 + $0xf8] sm:$0xf0]  ;;  %v1766_v1 = vor.u32 %v2465_v56, %v1765_v55 }
  0x26   :  { %1125 = vmatpush.bf16.msra.mxu0 %v1790_v41  ;;  %1150 = vmatpush.bf16.msra.mxu2 %v1994_v42  ;;  %v2053_v63 = vld [vmem:[#allocation5 + $0x270] sm:$0xf]  ;;  %v2537_v0 = vld [vmem:[#allocation5 + $0x278] sm:$0xf0]  ;;  %v1970_v2 = vor.u32 %v2516_v61, %v1969_v60  ;;  %v1753_v3 = vld [vmem:[#allocation5 + $0x18] sm:$0xf]  ;;  %v1862_v5 = vor.u32 %v2489_v62, %v1861_v59 }
  0x27   :  { %1138 = vmatpush.bf16.msra.mxu1 %v1886_v45  ;;  %v2462_v4 = vld [vmem:[#allocation5 + $0x20] sm:$0xf0]  ;;  %v2054_v6 = vor.u32 %v2537_v0, %v2053_v63  ;;  %v1849_v7 = vld [vmem:[#allocation5 + $0xd8] sm:$0xf]  ;;  %v1957_v8 = vld [vmem:[#allocation5 + $0x1b0] sm:$0xf] }
  0x28   :  { %1164 = vmatpush.bf16.msra.mxu3 %v2078_v46  ;;  %v2513_v9 = vld [vmem:[#allocation5 + $0x1b8] sm:$0xf0]  ;;  %v2486_v10 = vld [vmem:[#allocation5 + $0xe0] sm:$0xf0]  ;;  %v2041_v11 = vld [vmem:[#allocation5 + $0x258] sm:$0xf]  ;;  %v1754_v14 = vor.u32 %v2462_v4, %v1753_v3 }
  0x29   :  { %v2534_v12 = vld [vmem:[#allocation5 + $0x260] sm:$0xf0]  ;;  %v1741_v13 = vld [vmem:[#allocation5] sm:$0xf]  ;;  %v1958_v15 = vor.u32 %v2513_v9, %v1957_v8  ;;  %v2459_v16 = vld [vmem:[#allocation5 + $0x8] sm:$0xf0]  ;;  %v1850_v19 = vor.u32 %v2486_v10, %v1849_v7 }
  0x2a   :  { %1126 = vmatpush.bf16.msra.mxu0 %v1778_v53  ;;  %1151 = vmatpush.bf16.msra.mxu2 %v1982_v54  ;;  %v1837_v17 = vld [vmem:[#allocation5 + $0xc0] sm:$0xf]  ;;  %v2483_v18 = vld [vmem:[#allocation5 + $0xc8] sm:$0xf0]  ;;  %v2042_v20 = vor.u32 %v2534_v12, %v2041_v11  ;;  %v1945_v22 = vld [vmem:[#allocation5 + $0x198] sm:$0xf]  ;;  %v1742_v30 = vor.u32 %v2459_v16, %v1741_v13 }
  0x2b   :  { %1139 = vmatpush.bf16.msra.mxu1 %v1874_v57  ;;  %v2029_v21 = vld [vmem:[#allocation5 + $0x240] sm:$0xf]  ;;  %v2510_v23 = vld [vmem:[#allocation5 + $0x1a0] sm:$0xf0]  ;;  %v2531_v24 = vld [vmem:[#allocation5 + $0x248] sm:$0xf0]  ;;  %v1838_v35 = vor.u32 %v2483_v18, %v1837_v17 }
  0x2c   :  { %1165 = vmatpush.bf16.msra.mxu3 %v2066_v58  ;;  %v2209_v25 = vld [vmem:[#allocation5 + $0x3a8] sm:$0xf]  ;;  %v2576_v26 = vld [vmem:[#allocation5 + $0x3b0] sm:$0xf0]  ;;  %v103_v29 = vld [vmem:[#allocation2 + $0x8] sm:$0xff]  ;;  %v1946_v31 = vor.u32 %v2510_v23, %v1945_v22  ;;  %v2030_v36 = vor.u32 %v2531_v24, %v2029_v21  ;;  %vm1118_vm0 = vcmask 130048  }
  0x2d   :  { %v2305_v27 = vld [vmem:[#allocation5 + $0x468] sm:$0xf]  ;;  %v2600_v28 = vld [vmem:[#allocation5 + $0x470] sm:$0xf0]  ;;  %v2479_v32 = vld [vmem:[#allocation5 + $0xac] sm:$0xf]  ;;  %v317_v34 = vunpack.c.h.b16 %v103_v29  ;;  %v2210_v39 = vor.u32 %v2576_v26, %v2209_v25  ;;  %v316_v48 = vunpack.c.l.b16 %v103_v29 }
  0x2e   :  { %1127 = vmatpush.bf16.msra.mxu0 %v1766_v1  ;;  %1152 = vmatpush.bf16.msra.mxu2 %v1970_v2  ;;  %v1827_v33 = vld [vmem:[#allocation5 + $0xb4] sm:$0xf0]  ;;  %v1933_v37 = vld [vmem:[#allocation5 + $0x180] sm:$0xf]  ;;  %v2507_v38 = vld [vmem:[#allocation5 + $0x188] sm:$0xf0]  ;;  %v2306_v40 = vor.u32 %v2600_v28, %v2305_v27 }
  0x2f   :  { %1140 = vmatpush.bf16.msra.mxu1 %v1862_v5  ;;  %v2197_v41 = vld [vmem:[#allocation5 + $0x390] sm:$0xf]  ;;  %v2317_v42 = vld [vmem:[#allocation5 + $0x480] sm:$0xf]  ;;  %v2603_v43 = vld [vmem:[#allocation5 + $0x488] sm:$0xf0]  ;;  %v1830_v44 = vor.u32 %v2479_v32, %v1827_v33  ;;  %v1934_v49 = vor.u32 %v2507_v38, %v1933_v37  ;;  %v2866_v53 = vpack.c.b16 %v317_v34, %v317_v34  ;;  %v2868_v63 = vpack.c.b16 %v316_v48, %v316_v48 }
  0x30   :  { %1166 = vmatpush.bf16.msra.mxu3 %v2054_v6  ;;  %v2573_v45 = vld [vmem:[#allocation5 + $0x398] sm:$0xf0]  ;;  %v2293_v46 = vld [vmem:[#allocation5 + $0x450] sm:$0xf]  ;;  %v2476_v50 = vld [vmem:[#allocation5 + $0x94] sm:$0xf]  ;;  %v2318_v54 = vor.u32 %v2603_v43, %v2317_v42 }
  0x31   :  { %v2597_v47 = vld [vmem:[#allocation5 + $0x458] sm:$0xf0]  ;;  %v1815_v51 = vld [vmem:[#allocation5 + $0x9c] sm:$0xf0]  ;;  %v102_v52 = vld [vmem:[#allocation2] sm:$0xff]  ;;  %v2198_v59 = vor.u32 %v2573_v45, %v2197_v41  ;;  %s2810_s29 = smov [#allocation11]  }
  0x32   :  { %1128 = vmatpush.bf16.msra.mxu0 %v1754_v14  ;;  %1153 = vmatpush.bf16.msra.mxu2 %v1958_v15  ;;  %v2503_v55 = vld [vmem:[#allocation5 + $0x16c] sm:$0xf]  ;;  %v1923_v56 = vld [vmem:[#allocation5 + $0x174] sm:$0xf0]  ;;  %v314_v57 = vunpack.c.l.b16 %v102_v52  ;;  %v315_v58 = vunpack.c.h.b16 %v102_v52  ;;  %v2294_v60 = vor.u32 %v2597_v47, %v2293_v46  ;;  %v1818_v62 = vor.u32 %v2476_v50, %v1815_v51  ;;  %v2570_v0 = vld [vmem:[#allocation5 + $0x380] sm:$0xf0] }
  0x33   :  { %1141 = vmatpush.bf16.msra.mxu1 %v1850_v19  ;;  %v2185_v61 = vld [vmem:[#allocation5 + $0x378] sm:$0xf]  ;;  %v2594_v2 = vld [vmem:[#allocation5 + $0x440] sm:$0xf0]  ;;  %v2473_v4 = vld [vmem:[#allocation5 + $0x7c] sm:$0xf]  ;;  %v1926_v6 = vor.u32 %v2503_v55, %v1923_v56 }
  0x34   :  { %1167 = vmatpush.bf16.msra.mxu3 %v2042_v20  ;;  %v2281_v1 = vld [vmem:[#allocation5 + $0x438] sm:$0xf]  ;;  %v2870_v3 = vpack.c.b16 %v314_v57, %v314_v57  ;;  %v1803_v5 = vld [vmem:[#allocation5 + $0x84] sm:$0xf0]  ;;  %v2872_v7 = vpack.c.b16 %v315_v58, %v315_v58  ;;  %v2500_v8 = vld [vmem:[#allocation5 + $0x154] sm:$0xf]  ;;  %v2186_v10 = vor.u32 %v2570_v0, %v2185_v61 }
  0x35   :  { %v1911_v9 = vld [vmem:[#allocation5 + $0x15c] sm:$0xf0]  ;;  %v2282_v11 = vor.u32 %v2594_v2, %v2281_v1  ;;  %v1806_v13 = vor.u32 %v2473_v4, %v1803_v5  ;;  %v2567_v14 = vld [vmem:[#allocation5 + $0x368] sm:$0xf0]  ;;  %v2470_v17 = vld [vmem:[#allocation5 + $0x64] sm:$0xf] }
  0x36   :  { %1129 = vmatpush.bf16.msra.mxu0 %v1742_v30  ;;  %1154 = vmatpush.bf16.msra.mxu2 %v1946_v31  ;;  %v2173_v12 = vld [vmem:[#allocation5 + $0x360] sm:$0xf]  ;;  %v2591_v16 = vld [vmem:[#allocation5 + $0x428] sm:$0xf0]  ;;  %v1791_v18 = vld [vmem:[#allocation5 + $0x6c] sm:$0xf0]  ;;  %v1914_v19 = vor.u32 %v2500_v8, %v1911_v9 }
  0x37   :  { %1142 = vmatpush.bf16.msra.mxu1 %v1838_v35  ;;  %v2269_v15 = vld [vmem:[#allocation5 + $0x420] sm:$0xf]  ;;  %v2497_v20 = vld [vmem:[#allocation5 + $0x13c] sm:$0xf]  ;;  %v1899_v21 = vld [vmem:[#allocation5 + $0x144] sm:$0xf0]  ;;  %v2174_v22 = vor.u32 %v2567_v14, %v2173_v12  ;;  %v1794_v25 = vor.u32 %v2470_v17, %v1791_v18 }
  0x38   :  { %1168 = vmatpush.bf16.msra.mxu3 %v2030_v36  ;;  %v2270_v23 = vor.u32 %v2591_v16, %v2269_v15  ;;  %v2161_v24 = vld [vmem:[#allocation5 + $0x348] sm:$0xf]  ;;  %v2564_v26 = vld [vmem:[#allocation5 + $0x350] sm:$0xf0]  ;;  %v2467_v29 = vld [vmem:[#allocation5 + $0x4c] sm:$0xf]  ;;  %v1902_v31 = vor.u32 %v2497_v20, %v1899_v21 }
  0x39   :  { %1130 = vmatmul.bf16.vlgmr.msra.gmra.mxu0 %v2870_v3  ;;  %v2257_v27 = vld [vmem:[#allocation5 + $0x408] sm:$0xf]  ;;  %v2588_v28 = vld [vmem:[#allocation5 + $0x410] sm:$0xf0]  ;;  %v1779_v30 = vld [vmem:[#allocation5 + $0x54] sm:$0xf0]  ;;  %v2162_v35 = vor.u32 %v2564_v26, %v2161_v24 }
  0x3a   :  { %1174 = vmatpush.bf16.msrb.mxu0 %v2210_v39  ;;  %1155 = vmatpush.bf16.msra.mxu2 %v1934_v49  ;;  %v105_v32 = vld [vmem:[#allocation2 + $0x18] sm:$0xf]  ;;  %v2494_v33 = vld [vmem:[#allocation5 + $0x124] sm:$0xf]  ;;  %v1887_v34 = vld [vmem:[#allocation5 + $0x12c] sm:$0xf0]  ;;  %v2258_v36 = vor.u32 %v2588_v28, %v2257_v27  ;;  %v1782_v38 = vor.u32 %v2467_v29, %v1779_v30 }
  0x3b   :  { %1187 = vmatpush.bf16.msrb.mxu1 %v2306_v40  ;;  %1169 = vmatmul.bf16.vlgmr.msra.gmra.mxu3 %v2866_v53  ;;  %v2149_v37 = vld [vmem:[#allocation5 + $0x330] sm:$0xf]  ;;  %v2561_v39 = vld [vmem:[#allocation5 + $0x338] sm:$0xf0]  ;;  %v320_v42 = vunpack.c.l.b16 %v105_v32  ;;  %v2464_v43 = vld [vmem:[#allocation5 + $0x34] sm:$0xf]  ;;  %v1890_v45 = vor.u32 %v2494_v33, %v1887_v34 }
  0x3c   :  { %1213 = vmatpush.bf16.msrb.mxu3 %v1830_v44  ;;  %1143 = vmatmul.bf16.vlgmr.msra.gmra.mxu1 %v2872_v7  ;;  %v2245_v40 = vld [vmem:[#allocation5 + $0x3f0] sm:$0xf]  ;;  %v2585_v41 = vld [vmem:[#allocation5 + $0x3f8] sm:$0xf0]  ;;  %v1767_v44 = vld [vmem:[#allocation5 + $0x3c] sm:$0xf0]  ;;  %v2150_v48 = vor.u32 %v2561_v39, %v2149_v37 }
  0x3d   :  { %1156 = vmatmul.bf16.vlgmr.msra.gmra.mxu2 %v2868_v63  ;;  %v2491_v46 = vld [vmem:[#allocation5 + $0x10c] sm:$0xf]  ;;  %v1875_v47 = vld [vmem:[#allocation5 + $0x114] sm:$0xf0]  ;;  %v2246_v49 = vor.u32 %v2585_v41, %v2245_v40  ;;  %v1770_v51 = vor.u32 %v2464_v43, %v1767_v44  ;;  %v2558_v52 = vld [vmem:[#allocation5 + $0x320] sm:$0xf0]  ;;  %v2878_v56 = vpack.c.b16 %v320_v42, %v320_v42 }
  0x3e   :  { %1207 = vmatpush.bf16.msrb.mxu2 %v2318_v54  ;;  %1175 = vmatpush.bf16.msrb.mxu0 %v2198_v59  ;;  %v2137_v50 = vld [vmem:[#allocation5 + $0x318] sm:$0xf]  ;;  %v2582_v55 = vld [vmem:[#allocation5 + $0x3e0] sm:$0xf0]  ;;  %v2461_v57 = vld [vmem:[#allocation5 + $0x1c] sm:$0xf]  ;;  %v1878_v59 = vor.u32 %v2491_v46, %v1875_v47 }
  0x3f   :  { %1188 = vmatpush.bf16.msrb.mxu1 %v2294_v60  ;;  %v2233_v54 = vld [vmem:[#allocation5 + $0x3d8] sm:$0xf]  ;;  %v1755_v58 = vld [vmem:[#allocation5 + $0x24] sm:$0xf0]  ;;  %v2125_v60 = vld [vmem:[#allocation5 + $0x300] sm:$0xf]  ;;  %v2138_v0 = vor.u32 %v2558_v52, %v2137_v50 }
  0x40   :  { %1214 = vmatpush.bf16.msrb.mxu3 %v1818_v62  ;;  %v2488_v61 = vld [vmem:[#allocation5 + $0xf4] sm:$0xf]  ;;  %v1863_v62 = vld [vmem:[#allocation5 + $0xfc] sm:$0xf0]  ;;  %v2234_v1 = vor.u32 %v2582_v55, %v2233_v54  ;;  %v2555_v2 = vld [vmem:[#allocation5 + $0x308] sm:$0xf0] }
  0x41   :  { %v2221_v4 = vld [vmem:[#allocation5 + $0x3c0] sm:$0xf]  ;;  %v104_v5 = vld [vmem:[#allocation2 + $0x10] sm:$0xff]  ;;  %v2579_v8 = vld [vmem:[#allocation5 + $0x3c8] sm:$0xf0]  ;;  %s1725_s30 = sshll.u32 %s2810_s29, 4  ;;  %s1726_s30 = int_to_ptr.vmem [resolvable:$true] %s1725_s30 }
  0x42   :  { %1226 = vmatpush.bf16.msra.mxu2 %v1926_v6  ;;  %1176 = vmatpush.bf16.msrb.mxu0 %v2186_v10  ;;  %v1758_v6 = vor.u32 %v2461_v57, %v1755_v58  ;;  %v2458_v9 = vld [vmem:[#allocation5 + $0x4] sm:$0xf]  ;;  %v1743_v10 = vld [vmem:[#allocation5 + $0xc] sm:$0xf0]  ;;  %v2527_v12 = vld [vmem:[#allocation5 + $0x22c] sm:$0xf]  ;;  %v318_v18 = vunpack.c.l.b16 %v104_v5  ;;  %v2222_v20 = vor.u32 %v2579_v8, %v2221_v4 }
  0x43   :  { %1189 = vmatpush.bf16.msrb.mxu1 %v2282_v11  ;;  %v1866_v11 = vor.u32 %v2488_v61, %v1863_v62  ;;  %v2551_v14 = vld [vmem:[#allocation5 + $0x2ec] sm:$0xf]  ;;  %v2115_v15 = vld [vmem:[#allocation5 + $0x2f4] sm:$0xf0]  ;;  %v2485_v21 = vld [vmem:[#allocation5 + $0xdc] sm:$0xf]  ;;  %v1746_v24 = vor.u32 %v2458_v9, %v1743_v10 }
  0x44   :  { %1215 = vmatpush.bf16.msrb.mxu3 %v1806_v13  ;;  %v2019_v13 = vld [vmem:[#allocation5 + $0x234] sm:$0xf0]  ;;  %v2575_v16 = vld [vmem:[#allocation5 + $0x3ac] sm:$0xf]  ;;  %v2118_v26 = vor.u32 %v2551_v14, %v2115_v15  ;;  %v2524_v28 = vld [vmem:[#allocation5 + $0x214] sm:$0xf] }
  0x45   :  { %v2211_v17 = vld [vmem:[#allocation5 + $0x3b4] sm:$0xf0]  ;;  %v2007_v29 = vld [vmem:[#allocation5 + $0x21c] sm:$0xf0]  ;;  %v2548_v30 = vld [vmem:[#allocation5 + $0x2d4] sm:$0xf] }
  0x46   :  { %1227 = vmatpush.bf16.msra.mxu2 %v1914_v19  ;;  %1177 = vmatpush.bf16.msrb.mxu0 %v2174_v22  ;;  %v2126_v19 = vor.u32 %v2555_v2, %v2125_v60  ;;  %v1851_v22 = vld [vmem:[#allocation5 + $0xe4] sm:$0xf0]  ;;  %v2214_v27 = vor.u32 %v2575_v16, %v2211_v17  ;;  %v2103_v33 = vld [vmem:[#allocation5 + $0x2dc] sm:$0xf0]  ;;  %v2572_v34 = vld [vmem:[#allocation5 + $0x394] sm:$0xf]  ;;  %v2010_v39 = vor.u32 %v2524_v28, %v2007_v29 }
  0x47   :  { %1190 = vmatpush.bf16.msrb.mxu1 %v2270_v23  ;;  %v319_v23 = vunpack.c.h.b16 %v104_v5  ;;  %v1854_v32 = vor.u32 %v2485_v21, %v1851_v22  ;;  %v2482_v37 = vld [vmem:[#allocation5 + $0xc4] sm:$0xf]  ;;  %v2599_v40 = vld [vmem:[#allocation5 + $0x46c] sm:$0xf]  ;;  %v2307_v41 = vld [vmem:[#allocation5 + $0x474] sm:$0xf0]  ;;  %v2106_v42 = vor.u32 %v2548_v30, %v2103_v33 }
  0x48   :  { %1216 = vmatpush.bf16.msrb.mxu3 %v1794_v25  ;;  %v2022_v25 = vor.u32 %v2527_v12, %v2019_v13  ;;  %v2521_v44 = vld [vmem:[#allocation5 + $0x1fc] sm:$0xf]  ;;  %v2187_v50 = vld [vmem:[#allocation5 + $0x384] sm:$0xf0]  ;;  %v2596_v54 = vld [vmem:[#allocation5 + $0x454] sm:$0xf] }
  0x49   :  { %v2545_v46 = vld [vmem:[#allocation5 + $0x2bc] sm:$0xf]  ;;  %v2295_v55 = vld [vmem:[#allocation5 + $0x45c] sm:$0xf0]  ;;  %v1983_v60 = vld [vmem:[#allocation5 + $0x1ec] sm:$0xf0] }
  0x4a   :  { %1228 = vmatpush.bf16.msra.mxu2 %v1902_v31  ;;  %1178 = vmatpush.bf16.msrb.mxu0 %v2162_v35  ;;  %v2882_v31 = vpack.c.b16 %v318_v18, %v318_v18  ;;  %v2199_v35 = vld [vmem:[#allocation5 + $0x39c] sm:$0xf0]  ;;  %v2542_v61 = vld [vmem:[#allocation5 + $0x2a4] sm:$0xf]  ;;  %v2079_v62 = vld [vmem:[#allocation5 + $0x2ac] sm:$0xf0]  ;;  %v2298_v2 = vor.u32 %v2596_v54, %v2295_v55 }
  0x4b   :  { %1191 = vmatpush.bf16.msrb.mxu1 %v2258_v36  ;;  %v2884_v36 = vpack.c.b16 %v319_v23, %v319_v23  ;;  %v2202_v43 = vor.u32 %v2572_v34, %v2199_v35  ;;  %v2593_v5 = vld [vmem:[#allocation5 + $0x43c] sm:$0xf]  ;;  %v2082_v8 = vor.u32 %v2542_v61, %v2079_v62  ;;  %v2515_v10 = vld [vmem:[#allocation5 + $0x1cc] sm:$0xf]  ;;  %v2067_v13 = vld [vmem:[#allocation5 + $0x294] sm:$0xf0] }
  0x4c   :  { %1217 = vmatpush.bf16.msrb.mxu3 %v1782_v38  ;;  %v1839_v38 = vld [vmem:[#allocation5 + $0xcc] sm:$0xf0]  ;;  %v2539_v12 = vld [vmem:[#allocation5 + $0x28c] sm:$0xf]  ;;  %v2163_v15 = vld [vmem:[#allocation5 + $0x354] sm:$0xf0] }
  0x4d   :  { %2327 = vmatmul.msk.bf16.vlgmr.msrb.gmra.mxu2 %vm1118_vm0, %v2878_v56  ;;  %v1842_v47 = vor.u32 %v2482_v37, %v1839_v38  ;;  %v2563_v14 = vld [vmem:[#allocation5 + $0x34c] sm:$0xf]  ;;  %v2512_v17 = vld [vmem:[#allocation5 + $0x1b4] sm:$0xf]  ;;  %v2271_v21 = vld [vmem:[#allocation5 + $0x42c] sm:$0xf0]  ;;  %v2070_v22 = vor.u32 %v2539_v12, %v2067_v13 }
  0x4e   :  { %1229 = vmatpush.bf16.msra.mxu2 %v1890_v45  ;;  %1179 = vmatpush.bf16.msrb.mxu0 %v2150_v48  ;;  %v1995_v45 = vld [vmem:[#allocation5 + $0x204] sm:$0xf0]  ;;  %v2166_v23 = vor.u32 %v2563_v14, %v2163_v15  ;;  %v2587_v30 = vld [vmem:[#allocation5 + $0x40c] sm:$0xf]  ;;  %v2509_v35 = vld [vmem:[#allocation5 + $0x19c] sm:$0xf] }
  0x4f   :  { %1192 = vmatpush.bf16.msrb.mxu1 %v2246_v49  ;;  %v2091_v48 = vld [vmem:[#allocation5 + $0x2c4] sm:$0xf0]  ;;  %v2569_v49 = vld [vmem:[#allocation5 + $0x37c] sm:$0xf]  ;;  %v1998_v52 = vor.u32 %v2521_v44, %v1995_v45  ;;  %v2506_v44 = vld [vmem:[#allocation5 + $0x184] sm:$0xf] }
  0x50   :  { %1218 = vmatpush.bf16.msrb.mxu3 %v1770_v51  ;;  %v2310_v51 = vor.u32 %v2599_v40, %v2307_v41  ;;  %v2094_v57 = vor.u32 %v2545_v46, %v2091_v48  ;;  %v2190_v58 = vor.u32 %v2569_v49, %v2187_v50  ;;  %v1947_v37 = vld [vmem:[#allocation5 + $0x1a4] sm:$0xf0]  ;;  %v2533_v38 = vld [vmem:[#allocation5 + $0x25c] sm:$0xf]  ;;  %v2584_v45 = vld [vmem:[#allocation5 + $0x3f4] sm:$0xf] }
  0x51   :  { %v2557_v40 = vld [vmem:[#allocation5 + $0x31c] sm:$0xf]  ;;  %v2139_v41 = vld [vmem:[#allocation5 + $0x324] sm:$0xf0]  ;;  %v2247_v46 = vld [vmem:[#allocation5 + $0x3fc] sm:$0xf0] }
  0x52   :  { %1230 = vmatpush.bf16.msra.mxu2 %v1878_v59  ;;  %1180 = vmatpush.bf16.msrb.mxu0 %v2138_v0  ;;  %v2518_v59 = vld [vmem:[#allocation5 + $0x1e4] sm:$0xf]  ;;  %v2142_v48 = vor.u32 %v2557_v40, %v2139_v41  ;;  %v1935_v49 = vld [vmem:[#allocation5 + $0x18c] sm:$0xf0]  ;;  %v2581_v62 = vld [vmem:[#allocation5 + $0x3dc] sm:$0xf] }
  0x53   :  { %1193 = vmatpush.bf16.msrb.mxu1 %v2234_v1  ;;  %v2566_v0 = vld [vmem:[#allocation5 + $0x364] sm:$0xf]  ;;  %v2175_v1 = vld [vmem:[#allocation5 + $0x36c] sm:$0xf0]  ;;  %v1986_v4 = vor.u32 %v2518_v59, %v1983_v60  ;;  %v2505_v60 = vld [vmem:[#allocation5 + $0x178] sm:$0xf0]  ;;  %v1938_v61 = vor.u32 %v2506_v44, %v1935_v49 }
  0x54   :  { %1219 = vmatpush.bf16.msrb.mxu3 %v1758_v6  ;;  %v2283_v6 = vld [vmem:[#allocation5 + $0x444] sm:$0xf0]  ;;  %v2178_v9 = vor.u32 %v2566_v0, %v2175_v1  ;;  %v2530_v50 = vld [vmem:[#allocation5 + $0x244] sm:$0xf]  ;;  %v2127_v54 = vld [vmem:[#allocation5 + $0x30c] sm:$0xf0] }
  0x55   :  { %v2286_v16 = vor.u32 %v2593_v5, %v2283_v6  ;;  %v1833_v55 = vld [vmem:[#allocation5 + $0xb0] sm:$0xf]  ;;  %v2235_v0 = vld [vmem:[#allocation5 + $0x3e4] sm:$0xf0]  ;;  %v1917_v12 = vld [vmem:[#allocation5 + $0x158] sm:$0xf] }
  0x56   :  { %1231 = vmatpush.bf16.msra.mxu2 %v1866_v11  ;;  %1181 = vmatpush.bf16.msrb.mxu0 %v2126_v19  ;;  %v1971_v11 = vld [vmem:[#allocation5 + $0x1d4] sm:$0xf0]  ;;  %v1959_v19 = vld [vmem:[#allocation5 + $0x1bc] sm:$0xf0]  ;;  %v1929_v59 = vld [vmem:[#allocation5 + $0x170] sm:$0xf] }
  0x57   :  { %1194 = vmatpush.bf16.msrb.mxu1 %v2222_v20  ;;  %v1974_v18 = vor.u32 %v2515_v10, %v1971_v11  ;;  %v2590_v20 = vld [vmem:[#allocation5 + $0x424] sm:$0xf]  ;;  %v1962_v29 = vor.u32 %v2512_v17, %v1959_v19  ;;  %v1930_v6 = vor.u32 %v2505_v60, %v1929_v59  ;;  %v2319_v10 = vld [vmem:[#allocation5 + $0x48c] sm:$0xf0]  ;;  %v2238_v11 = vor.u32 %v2581_v62, %v2235_v0  ;;  %v2529_v17 = vld [vmem:[#allocation5 + $0x238] sm:$0xf0] }
  0x58   :  { %1220 = vmatpush.bf16.msrb.mxu3 %v1746_v24  ;;  %v2536_v24 = vld [vmem:[#allocation5 + $0x274] sm:$0xf]  ;;  %v2274_v28 = vor.u32 %v2590_v20, %v2271_v21  ;;  %v2502_v13 = vld [vmem:[#allocation5 + $0x160] sm:$0xf0]  ;;  %v2223_v15 = vld [vmem:[#allocation5 + $0x3cc] sm:$0xf0] }
  0x59   :  { %1182 = vmatmul.bf16.vlgmr.msrb.gmra.mxu0 %v2882_v31  ;;  %v2578_v14 = vld [vmem:[#allocation5 + $0x3c4] sm:$0xf]  ;;  %v2121_v19 = vld [vmem:[#allocation5 + $0x2f0] sm:$0xf]  ;;  %v2553_v20 = vld [vmem:[#allocation5 + $0x2f8] sm:$0xf0] }
  0x5a   :  { %1239 = vmatpush.bf16.msra.mxu0 %v2022_v25  ;;  %1232 = vmatpush.bf16.msra.mxu2 %v1854_v32  ;;  %v2055_v25 = vld [vmem:[#allocation5 + $0x27c] sm:$0xf0]  ;;  %v2259_v32 = vld [vmem:[#allocation5 + $0x414] sm:$0xf0]  ;;  %v1893_v40 = vld [vmem:[#allocation5 + $0x128] sm:$0xf] }
  0x5b   :  { %1252 = vmatpush.bf16.msra.mxu1 %v2118_v26  ;;  %1221 = vmatmul.bf16.vlgmr.msrb.gmra.mxu3 %v2870_v3  ;;  %v2560_v26 = vld [vmem:[#allocation5 + $0x334] sm:$0xf]  ;;  %v2058_v33 = vor.u32 %v2536_v24, %v2055_v25  ;;  %v2226_v24 = vor.u32 %v2578_v14, %v2223_v15  ;;  %v2475_v25 = vld [vmem:[#allocation5 + $0x88] sm:$0xf0]  ;;  %v2085_v60 = vld [vmem:[#allocation5 + $0x2a8] sm:$0xf] }
  0x5c   :  { %1265 = vmatpush.bf16.msra.mxu3 %v2214_v27  ;;  %1195 = vmatmul.bf16.vlgmr.msrb.gmra.mxu1 %v2884_v36  ;;  %v2151_v27 = vld [vmem:[#allocation5 + $0x33c] sm:$0xf0]  ;;  %v2496_v41 = vld [vmem:[#allocation5 + $0x130] sm:$0xf0]  ;;  %v2523_v44 = vld [vmem:[#allocation5 + $0x208] sm:$0xf0] }
  0x5d   :  { %v2154_v34 = vor.u32 %v2560_v26, %v2151_v27  ;;  %v1905_v26 = vld [vmem:[#allocation5 + $0x140] sm:$0xf]  ;;  %v2499_v27 = vld [vmem:[#allocation5 + $0x148] sm:$0xf0]  ;;  %v1894_v49 = vor.u32 %v2496_v41, %v1893_v40  ;;  %v2520_v59 = vld [vmem:[#allocation5 + $0x1f0] sm:$0xf0] }
  0x5e   :  { %1240 = vmatpush.bf16.msra.mxu0 %v2010_v39  ;;  %1233 = vmatpush.bf16.msra.mxu2 %v1842_v47  ;;  %v2043_v39 = vld [vmem:[#allocation5 + $0x264] sm:$0xf0]  ;;  %v1761_v15 = vld [vmem:[#allocation5 + $0x20] sm:$0xf]  ;;  %v2511_v40 = vld [vmem:[#allocation5 + $0x1a8] sm:$0xf0] }
  0x5f   :  { %1253 = vmatpush.bf16.msra.mxu1 %v2106_v42  ;;  %v2262_v42 = vor.u32 %v2587_v30, %v2259_v32  ;;  %v2046_v47 = vor.u32 %v2533_v38, %v2043_v39  ;;  %v2526_v30 = vld [vmem:[#allocation5 + $0x220] sm:$0xf0]  ;;  %v2122_v32 = vor.u32 %v2553_v20, %v2121_v19  ;;  %v1797_v38 = vld [vmem:[#allocation5 + $0x68] sm:$0xf]  ;;  %v2472_v39 = vld [vmem:[#allocation5 + $0x70] sm:$0xf0] }
  0x60   :  { %1266 = vmatpush.bf16.msra.mxu3 %v2202_v43  ;;  %v1950_v43 = vor.u32 %v2509_v35, %v1947_v37  ;;  %v1906_v37 = vor.u32 %v2499_v27, %v1905_v26  ;;  %v1965_v20 = vld [vmem:[#allocation5 + $0x1b8] sm:$0xf]  ;;  %v1749_v27 = vld [vmem:[#allocation5 + $0x8] sm:$0xf]  ;;  %v2049_v41 = vld [vmem:[#allocation5 + $0x260] sm:$0xf] }
  0x61   :  { %1234 = vmatmul.bf16.vlgmr.msra.gmra.mxu2 %v2872_v7  ;;  %s1727_s10 = sshll.u32 %s2925_s7, 4  ;;  %s1728_s10 = int_to_ptr.hbm [resolvable:$true] %s1727_s10 }
  0x62   :  { %1278 = vmatpush.bf16.msrb.mxu2 %v2310_v51  ;;  %1241 = vmatpush.bf16.msra.mxu0 %v1998_v52  ;;  %v2031_v51 = vld [vmem:[#allocation5 + $0x24c] sm:$0xf0]  ;;  %v2554_v52 = vld [vmem:[#allocation5 + $0x304] sm:$0xf] }
  0x63   :  { %1254 = vmatpush.bf16.msra.mxu1 %v2094_v57  ;;  %v2250_v57 = vor.u32 %v2584_v45, %v2247_v46  ;;  %v2034_v1 = vor.u32 %v2530_v50, %v2031_v51  ;;  %v2097_v46 = vld [vmem:[#allocation5 + $0x2c0] sm:$0xf]  ;;  %v1785_v50 = vld [vmem:[#allocation5 + $0x50] sm:$0xf]  ;;  %v2469_v51 = vld [vmem:[#allocation5 + $0x58] sm:$0xf0] }
  0x64   :  { %1267 = vmatpush.bf16.msra.mxu3 %v2190_v58  ;;  %v2481_v58 = vld [vmem:[#allocation5 + $0xb8] sm:$0xf0]  ;;  %v1786_v62 = vor.u32 %v2469_v51, %v1785_v50  ;;  %v2598_v50 = vld [vmem:[#allocation5 + $0x460] sm:$0xf0] }
  0x65   :  { %v1834_v5 = vor.u32 %v2481_v58, %v1833_v55 }
  0x66   :  { %1279 = vmatpush.bf16.msrb.mxu2 %v2298_v2  ;;  %1242 = vmatpush.bf16.msra.mxu0 %v1986_v4  ;;  %v2130_v2 = vor.u32 %v2554_v52, %v2127_v54  ;;  %v1821_v4 = vld [vmem:[#allocation5 + $0x98] sm:$0xf]  ;;  %v1881_v52 = vld [vmem:[#allocation5 + $0x110] sm:$0xf]  ;;  %v2493_v54 = vld [vmem:[#allocation5 + $0x118] sm:$0xf0] }
  0x67   :  { %1255 = vmatpush.bf16.msra.mxu1 %v2082_v8  ;;  %v2478_v8 = vld [vmem:[#allocation5 + $0xa0] sm:$0xf0]  ;;  %v1882_v0 = vor.u32 %v2493_v54, %v1881_v52  ;;  %v1941_v52 = vld [vmem:[#allocation5 + $0x188] sm:$0xf] }
  0x68   :  { %1268 = vmatpush.bf16.msra.mxu3 %v2178_v9  ;;  %v2602_v9 = vld [vmem:[#allocation5 + $0x484] sm:$0xf]  ;;  %v1822_v21 = vor.u32 %v2478_v8, %v1821_v4  ;;  %v1869_v4 = vld [vmem:[#allocation5 + $0xf8] sm:$0xf]  ;;  %v1977_v8 = vld [vmem:[#allocation5 + $0x1d0] sm:$0xf] }
  0x6a   :  { %1280 = vmatpush.bf16.msrb.mxu2 %v2286_v16  ;;  %1243 = vmatpush.bf16.msra.mxu0 %v1974_v18  ;;  %v2025_v16 = vld [vmem:[#allocation5 + $0x230] sm:$0xf]  ;;  %v2322_v18 = vor.u32 %v2602_v9, %v2319_v10  ;;  %v2517_v10 = vld [vmem:[#allocation5 + $0x1d8] sm:$0xf0] }
  0x6b   :  { %1256 = vmatpush.bf16.msra.mxu1 %v2070_v22  ;;  %v1918_v22 = vor.u32 %v2502_v13, %v1917_v12  ;;  %v2541_v12 = vld [vmem:[#allocation5 + $0x298] sm:$0xf0]  ;;  %v1978_v19 = vor.u32 %v2517_v10, %v1977_v8 }
  0x6c   :  { %1269 = vmatpush.bf16.msra.mxu3 %v2166_v23  ;;  %v1809_v23 = vld [vmem:[#allocation5 + $0x80] sm:$0xf] }
  0x6d   :  { %v1810_v35 = vor.u32 %v2475_v25, %v1809_v23  ;;  %v2061_v23 = vld [vmem:[#allocation5 + $0x278] sm:$0xf] }
  0x6e   :  { %1281 = vmatpush.bf16.msrb.mxu2 %v2274_v28  ;;  %1244 = vmatpush.bf16.msra.mxu0 %v1962_v29  ;;  %v2026_v28 = vor.u32 %v2529_v17, %v2025_v16  ;;  %v2013_v29 = vld [vmem:[#allocation5 + $0x218] sm:$0xf]  ;;  %v2463_v16 = vld [vmem:[#allocation5 + $0x28] sm:$0xf0]  ;;  %v1857_v17 = vld [vmem:[#allocation5 + $0xe0] sm:$0xf] }
  0x6f   :  { %1257 = vmatpush.bf16.msra.mxu1 %v2058_v33  ;;  %v2109_v33 = vld [vmem:[#allocation5 + $0x2d8] sm:$0xf]  ;;  %v1762_v25 = vor.u32 %v2463_v16, %v1761_v15  ;;  %v2592_v15 = vld [vmem:[#allocation5 + $0x430] sm:$0xf0] }
  0x70   :  { %1270 = vmatpush.bf16.msra.mxu3 %v2154_v34  ;;  %v2550_v34 = vld [vmem:[#allocation5 + $0x2e0] sm:$0xf0] }
  0x71   :  { %v2110_v45 = vor.u32 %v2550_v34, %v2109_v33  ;;  %v2577_v33 = vld [vmem:[#allocation5 + $0x3b8] sm:$0xf0]  ;;  %v2313_v34 = vld [vmem:[#allocation5 + $0x470] sm:$0xf] }
  0x72   :  { %1282 = vmatpush.bf16.msrb.mxu2 %v2262_v42  ;;  %1245 = vmatpush.bf16.msra.mxu0 %v1950_v43  ;;  %v2014_v42 = vor.u32 %v2526_v30, %v2013_v29  ;;  %v2001_v43 = vld [vmem:[#allocation5 + $0x200] sm:$0xf]  ;;  %v1845_v29 = vld [vmem:[#allocation5 + $0xc8] sm:$0xf]  ;;  %v2484_v30 = vld [vmem:[#allocation5 + $0xd0] sm:$0xf0] }
  0x73   :  { %1258 = vmatpush.bf16.msra.mxu1 %v2046_v47  ;;  %v2547_v47 = vld [vmem:[#allocation5 + $0x2c8] sm:$0xf0]  ;;  %v2002_v55 = vor.u32 %v2523_v44, %v2001_v43  ;;  %v1846_v44 = vor.u32 %v2484_v30, %v1845_v29  ;;  %v2145_v29 = vld [vmem:[#allocation5 + $0x320] sm:$0xf] }
  0x74   :  { %1271 = vmatpush.bf16.msra.mxu3 %v2142_v48  ;;  %v1798_v48 = vor.u32 %v2472_v39, %v1797_v38  ;;  %v2098_v58 = vor.u32 %v2547_v47, %v2097_v46  ;;  %v1953_v38 = vld [vmem:[#allocation5 + $0x1a0] sm:$0xf]  ;;  %v2205_v47 = vld [vmem:[#allocation5 + $0x398] sm:$0xf] }
  0x75   :  { %v1954_v51 = vor.u32 %v2511_v40, %v1953_v38  ;;  %v2241_v30 = vld [vmem:[#allocation5 + $0x3e0] sm:$0xf]  ;;  %v2556_v38 = vld [vmem:[#allocation5 + $0x310] sm:$0xf0] }
  0x76   :  { %1283 = vmatpush.bf16.msrb.mxu2 %v2250_v57  ;;  %1246 = vmatpush.bf16.msra.mxu0 %v1938_v61  ;;  %v1989_v57 = vld [vmem:[#allocation5 + $0x1e8] sm:$0xf]  ;;  %v2544_v61 = vld [vmem:[#allocation5 + $0x2b0] sm:$0xf0] }
  0x77   :  { %1259 = vmatpush.bf16.msra.mxu1 %v2034_v1  ;;  %v1773_v1 = vld [vmem:[#allocation5 + $0x38] sm:$0xf]  ;;  %v2086_v9 = vor.u32 %v2544_v61, %v2085_v60  ;;  %v2604_v60 = vld [vmem:[#allocation5 + $0x490] sm:$0xf0] }
  0x78   :  { %1272 = vmatpush.bf16.msra.mxu3 %v2130_v2  ;;  %v2466_v2 = vld [vmem:[#allocation5 + $0x40] sm:$0xf0]  ;;  %v2580_v40 = vld [vmem:[#allocation5 + $0x3d0] sm:$0xf0] }
  0x79   :  { %1247 = vmatmul.bf16.vlgmr.msra.gmra.mxu0 %v2868_v63  ;;  %v1774_v13 = vor.u32 %v2466_v2, %v1773_v1  ;;  %v2571_v1 = vld [vmem:[#allocation5 + $0x388] sm:$0xf0]  ;;  %v2289_v2 = vld [vmem:[#allocation5 + $0x440] sm:$0xf] }
  0x7a   :  { %1284 = vmatpush.bf16.msrb.mxu2 %v2238_v11  ;;  %1260 = vmatmul.bf16.vlgmr.msra.gmra.mxu1 %v2866_v53  ;;  %v2073_v11 = vld [vmem:[#allocation5 + $0x290] sm:$0xf] }
  0x7b   :  { %1304 = vmatpush.bf16.msrb.mxu1 %v1834_v5  ;;  %1273 = vmatmul.bf16.vlgmr.msra.gmra.mxu3 %v2882_v31  ;;  %v2490_v5 = vld [vmem:[#allocation5 + $0x100] sm:$0xf0] }
  0x7c   :  { %1317 = vmatpush.bf16.msrb.mxu3 %v1930_v6  ;;  %1298 = vmatpush.bf16.msrb.mxu0 %v2322_v18  ;;  %v1990_v6 = vor.u32 %v2520_v59, %v1989_v57  ;;  %v1870_v14 = vor.u32 %v2490_v5, %v1869_v4  ;;  %v2487_v18 = vld [vmem:[#allocation5 + $0xe8] sm:$0xf0]  ;;  %v2037_v57 = vld [vmem:[#allocation5 + $0x248] sm:$0xf] }
  0x7d   :  { %v1858_v26 = vor.u32 %v2487_v18, %v1857_v17  ;;  %v2325_v59 = vld [vmem:[#allocation5 + $0x488] sm:$0xf]  ;;  %v2595_v4 = vld [vmem:[#allocation5 + $0x448] sm:$0xf0]  ;;  %v2169_v17 = vld [vmem:[#allocation5 + $0x350] sm:$0xf] }
  0x7e   :  { %1285 = vmatpush.bf16.msrb.mxu2 %v2226_v24  ;;  %v2538_v24 = vld [vmem:[#allocation5 + $0x280] sm:$0xf0]  ;;  %v2326_v8 = vor.u32 %v2604_v60, %v2325_v59  ;;  %v2265_v18 = vld [vmem:[#allocation5 + $0x410] sm:$0xf] }
  0x7f   :  { %1305 = vmatpush.bf16.msrb.mxu1 %v1822_v21  ;;  %v2074_v21 = vor.u32 %v2541_v12, %v2073_v11  ;;  %v2062_v39 = vor.u32 %v2538_v24, %v2061_v23  ;;  %v2290_v11 = vor.u32 %v2595_v4, %v2289_v2  ;;  %v2181_v12 = vld [vmem:[#allocation5 + $0x368] sm:$0xf]  ;;  %v2157_v23 = vld [vmem:[#allocation5 + $0x338] sm:$0xf]  ;;  %v2562_v24 = vld [vmem:[#allocation5 + $0x340] sm:$0xf0] }
  0x80   :  { %1318 = vmatpush.bf16.msrb.mxu3 %v1918_v22  ;;  %1330 = vmatpush.bf16.msra.mxu0 %v2026_v28  ;;  %v2514_v22 = vld [vmem:[#allocation5 + $0x1c0] sm:$0xf0]  ;;  %v2460_v28 = vld [vmem:[#allocation5 + $0x10] sm:$0xf0] }
  0x81   :  { %1286 = vmatmul.bf16.vlgmr.msrb.gmra.mxu2 %v2884_v36  ;;  %v1750_v43 = vor.u32 %v2460_v28, %v1749_v27  ;;  %v2158_v27 = vor.u32 %v2562_v24, %v2157_v23 }
  0x82   :  { %1343 = vmatpush.bf16.msra.mxu2 %v2122_v32  ;;  %v2217_v32 = vld [vmem:[#allocation5 + $0x3b0] sm:$0xf] }
  0x83   :  { %1306 = vmatpush.bf16.msrb.mxu1 %v1810_v35  ;;  %v2601_v35 = vld [vmem:[#allocation5 + $0x478] sm:$0xf0] }
  0x84   :  { %1319 = vmatpush.bf16.msrb.mxu3 %v1906_v37  ;;  %1331 = vmatpush.bf16.msra.mxu0 %v2014_v42  ;;  %v1966_v37 = vor.u32 %v2514_v22, %v1965_v20  ;;  %v2535_v42 = vld [vmem:[#allocation5 + $0x268] sm:$0xf0]  ;;  %v2314_v46 = vor.u32 %v2601_v35, %v2313_v34 }
  0x85   :  { %v2050_v54 = vor.u32 %v2535_v42, %v2049_v41  ;;  %v2611_v20 = vld [vmem:[#allocation8 + $0x30] sm:$0xff] }
  0x86   :  { %1344 = vmatpush.bf16.msra.mxu2 %v2110_v45  ;;  %v2218_v45 = vor.u32 %v2577_v33, %v2217_v32  ;;  %v2583_v32 = vld [vmem:[#allocation5 + $0x3e8] sm:$0xf0]  ;;  %v2610_v33 = vld [vmem:[#allocation8 + $0x28] sm:$0xff] }
  0x87   :  { %1307 = vmatpush.bf16.msrb.mxu1 %v1798_v48  ;;  %v2574_v48 = vld [vmem:[#allocation5 + $0x3a0] sm:$0xf0]  ;;  %v2242_v35 = vor.u32 %v2583_v32, %v2241_v30  ;;  %v2627_v30 = vld [vmem:[#allocation8 + $0xb0] sm:$0xff] }
  0x88   :  { %1320 = vmatpush.bf16.msrb.mxu3 %v1894_v49  ;;  %1332 = vmatpush.bf16.msra.mxu0 %v2002_v55  ;;  %v2301_v49 = vld [vmem:[#allocation5 + $0x458] sm:$0xf]  ;;  %v2508_v55 = vld [vmem:[#allocation5 + $0x190] sm:$0xf0]  ;;  %v2206_v61 = vor.u32 %v2574_v48, %v2205_v47  ;;  %v2605_v48 = vld [vmem:[#allocation8] sm:$0xff] }
  0x89   :  { %2328 = vmatmul.msk.bf16.vlgmr.msrb.gmra.mxu0 %vm1118_vm0, %v2878_v56  ;;  %v1942_v5 = vor.u32 %v2508_v55, %v1941_v52 }
  0x8a   :  { %1345 = vmatpush.bf16.msra.mxu2 %v2098_v58  ;;  %v2532_v58 = vld [vmem:[#allocation5 + $0x250] sm:$0xf0] }
  0x8b   :  { %1308 = vmatpush.bf16.msrb.mxu1 %v1786_v62  ;;  %v2302_v62 = vor.u32 %v2598_v50, %v2301_v49  ;;  %v2904_v50 = vld [vmem:[#allocation7] sm:$0x7] }
  0x8c   :  { %1321 = vmatpush.bf16.msrb.mxu3 %v1882_v0  ;;  %1333 = vmatpush.bf16.msra.mxu0 %v1990_v6  ;;  %v2193_v0 = vld [vmem:[#allocation5 + $0x380] sm:$0xf]  ;;  %v2038_v6 = vor.u32 %v2532_v58, %v2037_v57 }
  0x8d   :  { %v2194_v10 = vor.u32 %v2571_v1, %v2193_v0  ;;  %v2617_v1 = vld [vmem:[#allocation8 + $0x60] sm:$0xff] }
  0x8e   :  { %1346 = vmatpush.bf16.msra.mxu2 %v2086_v9  ;;  %v2612_v9 = vld [vmem:[#allocation8 + $0x38] sm:$0xff] }
  0x8f   :  { %1309 = vmatpush.bf16.msrb.mxu1 %v1774_v13  ;;  %v2568_v13 = vld [vmem:[#allocation5 + $0x370] sm:$0xf0] }
  0x90   :  { %1322 = vmatpush.bf16.msrb.mxu3 %v1870_v14  ;;  %1334 = vmatpush.bf16.msra.mxu0 %v1978_v19  ;;  %v2277_v14 = vld [vmem:[#allocation5 + $0x428] sm:$0xf]  ;;  %v2182_v16 = vor.u32 %v2568_v13, %v2181_v12  ;;  %v2589_v19 = vld [vmem:[#allocation5 + $0x418] sm:$0xf0] }
  0x91   :  { %v2266_v22 = vor.u32 %v2589_v19, %v2265_v18  ;;  %v2613_v18 = vld [vmem:[#allocation8 + $0x40] sm:$0xff]  ;;  %v305_v19 = vperm.slane %v2904_v50, 1 }
  0x92   :  { %1347 = vmatpush.bf16.msra.mxu2 %v2074_v21 }
  0x93   :  { %1310 = vmatpush.bf16.msrb.mxu1 %v1762_v25  ;;  %v2253_v25 = vld [vmem:[#allocation5 + $0x3f8] sm:$0xf] }
  0x94   :  { %1323 = vmatpush.bf16.msrb.mxu3 %v1858_v26  ;;  %1335 = vmatpush.bf16.msra.mxu0 %v1966_v37  ;;  %v2586_v26 = vld [vmem:[#allocation5 + $0x400] sm:$0xf0]  ;;  %v2133_v37 = vld [vmem:[#allocation5 + $0x308] sm:$0xf] }
  0x95   :  { %v2254_v28 = vor.u32 %v2586_v26, %v2253_v25  ;;  %v2134_v41 = vor.u32 %v2556_v38, %v2133_v37 }
  0x96   :  { %1348 = vmatpush.bf16.msra.mxu2 %v2062_v39  ;;  %v2229_v39 = vld [vmem:[#allocation5 + $0x3c8] sm:$0xf] }
  0x97   :  { %1311 = vmatpush.bf16.msrb.mxu1 %v1750_v43  ;;  %v2230_v42 = vor.u32 %v2580_v40, %v2229_v39  ;;  %v2608_v43 = vld [vmem:[#allocation8 + $0x18] sm:$0xff]  ;;  %v2625_v39 = vld [vmem:[#allocation8 + $0xa0] sm:$0xff] }
  0x98   :  { %1324 = vmatpush.bf16.msrb.mxu3 %v1846_v44  ;;  %1336 = vmatpush.bf16.msra.mxu0 %v1954_v51  ;;  %v2607_v44 = vld [vmem:[#allocation8 + $0x10] sm:$0xff]  ;;  %v2620_v51 = vld [vmem:[#allocation8 + $0x78] sm:$0xff] }
  0x9a   :  { %1349 = vmatpush.bf16.msra.mxu2 %v2050_v54  ;;  %1312 = vmatmul.bf16.vlgmr.msrb.gmra.mxu1 %v2870_v3  ;;  %v2565_v3 = vld [vmem:[#allocation5 + $0x358] sm:$0xf0]  ;;  %v304_v54 = vperm.slane %v2904_v50, 0 }
  0x9b   :  { %1356 = vmatpush.bf16.msra.mxu1 %v2218_v45  ;;  %1325 = vmatmul.bf16.vlgmr.msrb.gmra.mxu3 %v2872_v7  ;;  %v2278_v7 = vor.u32 %v2592_v15, %v2277_v14  ;;  %v2170_v21 = vor.u32 %v2565_v3, %v2169_v17  ;;  %v2606_v45 = vld [vmem:[#allocation8 + $0x8] sm:$0xff] }
  0x9c   :  { %1369 = vmatpush.bf16.msra.mxu3 %v2314_v46  ;;  %1337 = vmatpush.bf16.msra.mxu0 %v1942_v5 }
  0x9e   :  { %1350 = vmatpush.bf16.msra.mxu2 %v2038_v6 }
  0x9f   :  { %1357 = vmatpush.bf16.msra.mxu1 %v2206_v61  ;;  %1338 = vmatmul.bf16.vlgmr.msra.gmra.mxu0 %v2868_v63  ;;  %v2559_v63 = vld [vmem:[#allocation5 + $0x328] sm:$0xf0] }
  0xa0   :  { %1370 = vmatpush.bf16.msra.mxu3 %v2302_v62  ;;  %1389 = vmatpush.bf16.msrb.mxu0 %v2326_v8  ;;  %v2146_v34 = vor.u32 %v2559_v63, %v2145_v29  ;;  %v2618_v62 = vld [vmem:[#allocation8 + $0x68] sm:$0xff] }
  0xa1   :  { %1351 = vmatmul.bf16.vlgmr.msra.gmra.mxu2 %v2866_v53  ;;  %v2609_v53 = vld [vmem:[#allocation8 + $0x20] sm:$0xff] }
  0xa2   :  { %1597 = vmatpush.bf16.msrb.mxu2 %v2612_v9  ;;  %v2616_v9 = vld [vmem:[#allocation8 + $0x58] sm:$0xff] }
  0xa3   :  { %1358 = vmatpush.bf16.msra.mxu1 %v2194_v10 }
  0xa4   :  { %1371 = vmatpush.bf16.msra.mxu3 %v2290_v11  ;;  %1610 = vmatpush.bf16.msra.mxu0 %v2620_v51  ;;  %v2615_v11 = vld [vmem:[#allocation8 + $0x50] sm:$0xff]  ;;  %v2621_v51 = vld [vmem:[#allocation8 + $0x80] sm:$0xff] }
  0xa6   :  { %1598 = vmatpush.bf16.msrb.mxu2 %v2611_v20 }
  0xa7   :  { %1359 = vmatpush.bf16.msra.mxu1 %v2182_v16 }
  0xa8   :  { %1372 = vmatpush.bf16.msra.mxu3 %v2278_v7  ;;  %v2614_v7 = vld [vmem:[#allocation8 + $0x48] sm:$0xff] }
  0xaa   :  { %1599 = vmatpush.bf16.msrb.mxu2 %v2610_v33  ;;  %v2626_v33 = vld [vmem:[#allocation8 + $0xa8] sm:$0xff] }
  0xab   :  { %1360 = vmatpush.bf16.msra.mxu1 %v2170_v21 }
  0xac   :  { %1373 = vmatpush.bf16.msra.mxu3 %v2266_v22 }
  0xae   :  { %1600 = vmatpush.bf16.msrb.mxu2 %v2609_v53 }
  0xaf   :  { %1361 = vmatpush.bf16.msra.mxu1 %v2158_v27  ;;  %2329 = vmatmul.msk.bf16.vlgmr.msrb.gmra.mxu0 %vm1118_vm0, %v2878_v56 }
  0xb0   :  { %1374 = vmatpush.bf16.msra.mxu3 %v2254_v28  ;;  %v2628_v28 = vld [vmem:[#allocation8 + $0xb8] sm:$0xff] }
  0xb2   :  { %1601 = vmatpush.bf16.msrb.mxu2 %v2608_v43 }
  0xb3   :  { %1362 = vmatpush.bf16.msra.mxu1 %v2146_v34 }
  0xb4   :  { %1375 = vmatpush.bf16.msra.mxu3 %v2242_v35 }
  0xb6   :  { %1602 = vmatpush.bf16.msrb.mxu2 %v2607_v44  ;;  %v1131_v46 = vpop.f32.mrf.mxu0  ;;  %v2624_v44 = vld [vmem:[#allocation8 + $0x98] sm:$0xff] }
  0xb7   :  { %1363 = vmatpush.bf16.msra.mxu1 %v2134_v41 }
  0xb8   :  { %1376 = vmatpush.bf16.msra.mxu3 %v2230_v42 }
  0xb9   :  { %v1144_v47 = vpop.f32.mrf.mxu1 }
  0xba   :  { %1364 = vmatmul.bf16.vlgmr.msra.gmra.mxu1 %v2882_v31  ;;  %1603 = vmatpush.bf16.msrb.mxu2 %v2606_v45  ;;  %v2619_v31 = vld [vmem:[#allocation8 + $0x70] sm:$0xff] }
  0xbb   :  { %1377 = vmatmul.bf16.vlgmr.msra.gmra.mxu3 %v2884_v36  ;;  %v1132_v36 = vadd.f32 %v1131_v46, %v304_v54  ;;  %1611 = vmatpush.bf16.msra.mxu0 %v2619_v31  ;;  %v2623_v45 = vld [vmem:[#allocation8 + $0x90] sm:$0xff] }
  0xbc   :  { %1623 = vmatpush.bf16.msrb.mxu1 %v2628_v28  ;;  %v2648_v28 = vld [vmem:[%s2924_s6] ss:$0 sm:$0xff] }
  0xbd   :  { %v1145_v59 = vadd.f32 %v1144_v47, %v1132_v36  ;;  %v2622_v47 = vld [vmem:[#allocation8 + $0x88] sm:$0xff] }
  0xbe   :  { %v1170_v49 = vpop.f32.mrf.mxu3  ;;  %1604 = vmatpush.bf16.msrb.mxu2 %v2605_v48  ;;  %v1133_v52 = vpop.f32.mrf.mxu0 }
  0xbf   :  { %1612 = vmatpush.bf16.msra.mxu0 %v2618_v62 }
  0xc0   :  { %v1157_v56 = vpop.f32.mrf.mxu2  ;;  %1624 = vmatpush.bf16.msrb.mxu1 %v2627_v30 }
  0xc1   :  { %v1146_v55 = vpop.f32.mrf.mxu1  ;;  %v1158_v60 = vadd.f32 %v1157_v56, %v1145_v59 }
  0xc2   :  { %v306_v55 = vperm.slane %v2904_v50, 2  ;;  %v2636_v50 = vld [vmem:[#allocation10 + $0x38] sm:$0xff] }
  0xc3   :  { %v1171_v0 = vadd.f32 %v1170_v49, %v1158_v60  ;;  %1613 = vmatpush.bf16.msra.mxu0 %v2617_v1  ;;  %1706 = vmatpush.bf16.msrb.mxu3 %v2636_v50 }
  0xc4   :  { %1625 = vmatpush.bf16.msrb.mxu1 %v2626_v33 }
  0xc6   :  { %v1172_v57 = vpop.f32.mrf.mxu3 }
  0xc7   :  { %1614 = vmatpush.bf16.msra.mxu0 %v2616_v9 }
  0xc8   :  { %v1159_v58 = vpop.f32.mrf.mxu2  ;;  %1626 = vmatpush.bf16.msrb.mxu1 %v2625_v39 }
  0xcb   :  { %1615 = vmatpush.bf16.msra.mxu0 %v2615_v11 }
  0xcc   :  { %1627 = vmatpush.bf16.msrb.mxu1 %v2624_v44 }
  0xcf   :  { %1616 = vmatpush.bf16.msra.mxu0 %v2614_v7  ;;  %v2631_v7 = vld [vmem:[#allocation10 + $0x10] sm:$0xff] }
  0xd0   :  { %v1209_v61 = vpop.f32.mrf.mxu2  ;;  %1628 = vmatpush.bf16.msrb.mxu1 %v2623_v45 }
  0xd3   :  { %1617 = vmatpush.bf16.msra.mxu0 %v2613_v18  ;;  %v2630_v18 = vld [vmem:[#allocation10 + $0x8] sm:$0xff] }
  0xd4   :  { %1629 = vmatpush.bf16.msrb.mxu1 %v2622_v47 }
  0xd6   :  { %v1183_v2 = vpop.f32.mrf.mxu0 }
  0xd7   :  { %v1184_v4 = vadd.f32 %v1183_v2, %v1171_v0 }
  0xd8   :  { %v1211_v8 = vpop.f32.mrf.mxu2  ;;  %1630 = vmatpush.bf16.msrb.mxu1 %v2621_v51 }
  0xd9   :  { %v1196_v5 = vpop.f32.mrf.mxu1 }
  0xda   :  { %v1197_v6 = vadd.f32 %v1196_v5, %v1184_v4 }
  0xdc   :  { %v1210_v10 = vadd.f32 %v1209_v61, %v1197_v6 }
  0xde   :  { %v1395_v12 = vmax.f32 %v1210_v10, 0.0  ;;  %v1222_v13 = vpop.f32.mrf.mxu3  ;;  %v1185_v14 = vpop.f32.mrf.mxu0 }
  0xdf   :  { %v1223_v21 = vadd.f32 %v1222_v13, %v305_v19  ;;  %v2635_v13 = vld [vmem:[#allocation10 + $0x30] sm:$0xff]  ;;  %v2634_v14 = vld [vmem:[#allocation10 + $0x28] sm:$0xff]  ;;  %v2629_v19 = vld [vmem:[#allocation10] sm:$0xff] }
  0xe0   :  { %v1398_v15 = vpack.c.bf16 %v1395_v12, %v1395_v12  ;;  %1707 = vmatpush.bf16.msrb.mxu3 %v2635_v13 }
  0xe1   :  { %v1198_v16 = vpop.f32.mrf.mxu1 }
  0xe2   :  { %1605 = vmatmul.bf16.vlgmr.msrb.gmra.mxu2 %v1398_v15  ;;  %v2633_v15 = vld [vmem:[#allocation10 + $0x20] sm:$0xff]  ;;  %v2632_v16 = vld [vmem:[#allocation10 + $0x18] sm:$0xff] }
  0xe4   :  { %v1235_v17 = vpop.f32.mrf.mxu2  ;;  %1708 = vmatpush.bf16.msrb.mxu3 %v2634_v14 }
  0xe5   :  { %v1236_v22 = vadd.f32 %v1235_v17, %v1223_v21 }
  0xe6   :  { %v1224_v3 = vpop.f32.mrf.mxu3 }
  0xe8   :  { %1709 = vmatpush.bf16.msrb.mxu3 %v2633_v15 }
  0xec   :  { %v1237_v20 = vpop.f32.mrf.mxu2  ;;  %1710 = vmatpush.bf16.msrb.mxu3 %v2632_v16 }
  0xed   :  { %v2647_v20 = vld [vmem:[%s2922_s4] ss:$0 sm:$0xff] }
  0xf0   :  { %1711 = vmatpush.bf16.msrb.mxu3 %v2631_v7 }
  0xf4   :  { %1712 = vmatpush.bf16.msrb.mxu3 %v2630_v18 }
  0xf6   :  { %v1248_v23 = vpop.f32.mrf.mxu0 }
  0xf7   :  { %v1261_v24 = vpop.f32.mrf.mxu1  ;;  %v1249_v25 = vadd.f32 %v1248_v23, %v1236_v22 }
  0xf8   :  { %1713 = vmatpush.bf16.msrb.mxu3 %v2629_v19 }
  0xf9   :  { %v1262_v26 = vadd.f32 %v1261_v24, %v1249_v25 }
  0xfe   :  { %v1274_v27 = vpop.f32.mrf.mxu3  ;;  %v1250_v29 = vpop.f32.mrf.mxu0 }
  0xff   :  { %v1263_v63 = vpop.f32.mrf.mxu1  ;;  %v1275_v32 = vadd.f32 %v1274_v27, %v1262_v26 }
 0x104   :  { %v1287_v53 = vpop.f32.mrf.mxu2 }
 0x105   :  { %v1288_v34 = vadd.f32 %v1287_v53, %v1275_v32 }
 0x106   :  { %v1276_v35 = vpop.f32.mrf.mxu3  ;;  %v1300_v37 = vpop.f32.mrf.mxu0 }
 0x107   :  { %v1301_v38 = vadd.f32 %v1300_v37, %v1288_v34 }
 0x109   :  { %v1396_v40 = vmax.f32 %v1301_v38, 0.0 }
 0x10b   :  { %v1399_v41 = vpack.c.bf16 %v1396_v40, %v1396_v40 }
 0x10c   :  { %v1289_v42 = vpop.f32.mrf.mxu2 }
 0x10d   :  { %1618 = vmatmul.bf16.vlgmr.msra.gmra.mxu0 %v1399_v41 }
 0x10e   :  { %v1302_v43 = vpop.f32.mrf.mxu0 }
 0x117   :  { %v1313_v46 = vpop.f32.mrf.mxu1 }
 0x118   :  { %v1314_v36 = vadd.f32 %v1313_v46, %v306_v55 }
 0x11c   :  { %v1339_v49 = vpop.f32.mrf.mxu0 }
 0x11e   :  { %v1326_v48 = vpop.f32.mrf.mxu3 }
 0x11f   :  { %v1315_v56 = vpop.f32.mrf.mxu1  ;;  %v1327_v59 = vadd.f32 %v1326_v48, %v1314_v36 }
 0x121   :  { %v1340_v60 = vadd.f32 %v1339_v49, %v1327_v59 }
 0x124   :  { %v1352_v52 = vpop.f32.mrf.mxu2  ;;  %v1341_v31 = vpop.f32.mrf.mxu0 }
 0x125   :  { %v1353_v0 = vadd.f32 %v1352_v52, %v1340_v60 }
 0x126   :  { %v1328_v54 = vpop.f32.mrf.mxu3 }
 0x12c   :  { %v1354_v57 = vpop.f32.mrf.mxu2  ;;  %v1391_v58 = vpop.f32.mrf.mxu0 }
 0x134   :  { %v1393_v62 = vpop.f32.mrf.mxu0 }
 0x137   :  { %v1365_v61 = vpop.f32.mrf.mxu1 }
 0x138   :  { %v1366_v1 = vadd.f32 %v1365_v61, %v1353_v0 }
 0x13e   :  { %v1378_v2 = vpop.f32.mrf.mxu3 }
 0x13f   :  { %v1379_v4 = vadd.f32 %v1378_v2, %v1366_v1  ;;  %v1367_v5 = vpop.f32.mrf.mxu1 }
 0x141   :  { %v1392_v6 = vadd.f32 %v1391_v58, %v1379_v4 }
 0x143   :  { %v1397_v8 = vmax.f32 %v1392_v6, 0.0 }
 0x145   :  { %v1400_v9 = vpack.c.bf16 %v1397_v8, %v1397_v8 }
 0x146   :  { %v1380_v10 = vpop.f32.mrf.mxu3 }
 0x147   :  { %1631 = vmatmul.bf16.vlgmr.msrb.gmra.mxu1 %v1400_v9 }
 0x165   :  { %v1606_v11 = vpop.f32.mrf.mxu2 }
 0x166   :  { %v1607_v21 = vadd.f32 %v2647_v20, %v1606_v11 }
 0x16d   :  { %v1608_v12 = vpop.f32.mrf.mxu2 }
 0x18a   :  { %v1619_v17 = vpop.f32.mrf.mxu0 }
 0x18b   :  { %v1620_v22 = vadd.f32 %v1619_v17, %v1607_v21 }
 0x192   :  { %v1621_v3 = vpop.f32.mrf.mxu0 }
 0x1c4   :  { %v1632_v23 = vpop.f32.mrf.mxu1 }
 0x1c5   :  { %v1633_v24 = vadd.f32 %v1632_v23, %v1620_v22 }
 0x1c7   :  { %v1636_v25 = vmax.f32 %v1633_v24, 0.0 }
 0x1c9   :  { %v1637_v26 = vpack.c.bf16 %v1636_v25, %v1636_v25 }
 0x1cb   :  { %1714 = vmatmul.bf16.vlgmr.msrb.gmra.mxu3 %v1637_v26 }
 0x1cc   :  { %v1634_v27 = vpop.f32.mrf.mxu1 }
 0x24e   :  { %v1715_v29 = vpop.f32.mrf.mxu3 }
 0x24f   :  { %v1716_v63 = vadd.f32 %v2648_v28, %v1715_v29 }
 0x251   :  { %1719 = vst [vmem:[#allocation11] sm:$0xff] %v1716_v63 }
 0x252   :  { %1730 = dma.vmem_to_hbm [thread:$0]  %s1726_s30, 128, %s1728_s10, [#allocation4]  }
 0x256   :  { %v1717_v30 = vpop.f32.mrf.mxu3 }
 0x257   :  { %2799 = dma.done.wait [#allocation4], 128  }
 0x258   :  { %2800 = vsyncadd [#allocation4], 4294967168 }
 0x259   :  { %1735 = vsyncpa [#allocation3], 1 }
 0x25a   :  { %1736 = vsyncpa [#allocation6], 1 }
 0x25b   :  { %1737 = vsyncpa [#allocation9], 1 }
 0x25c   :  { %1738 = vsyncpa [#allocation4], 1 }

</bundles_post_ra>
